<compile_context>
chip_gen: v7x
topology: tpu7x:2x2x1
jax: 0.10.0
libtpu: 0.0.40
codegen_flags: <defaults>
</compile_context>

<pallas_src>
import jax
import jax.numpy as jnp
from jax import lax
from jax.experimental import pallas as pl
from jax.experimental.pallas import tpu as pltpu


# ----------------------------------------------------------------------------
# Kernel factory: one fused bidirectional LSTM layer over a time-tiled grid.
# ----------------------------------------------------------------------------
def _make_layer_kernel(*, TT, Bp, H, num_x, has_hsum, is_last, num_dirs_total):
    H4 = 4 * H

    # vreg-footprint-gated unroll: per unrolled iteration the live set is
    # roughly gates (Bp,8H) + fresh h/c (Bp,4H) in f32; one vreg = 1024 f32
    # elems; keep well under the 64-entry vreg file (same on v5e/v6e/v7x).
    vregs_per_iter = max(1, (Bp * 12 * H) // 1024)
    unroll = max(1, min(TT, 24 // vregs_per_iter))

    def kernel(*refs):
        idx = 0
        x_f = refs[idx:idx + num_x]; idx += num_x          # fwd-order x tiles
        x_b = refs[idx:idx + num_x]; idx += num_x          # bwd-order x tiles
        wih_ref = refs[idx]; idx += 1                      # (Fin, 8H)  bf16
        whh_ref = refs[idx]; idx += 1                      # (2H, 8H)   bf16
        b_ref = refs[idx]; idx += 1                        # (1, 8H)    f32
        if has_hsum:
            hsum_prev_ref = refs[idx]; idx += 1            # (Bp, H)    f32
        if is_last:
            fcw_ref = refs[idx]; idx += 1                  # (H, O)     f32
            fcb_ref = refs[idx]; idx += 1                  # (1, O)     f32
            logits_ref = refs[idx]; idx += 1               # (Bp, O)    f32
        else:
            outf_ref = refs[idx]; idx += 1                 # (TT*Bp, H) bf16
            outb_ref = refs[idx]; idx += 1                 # (TT*Bp, H) bf16
            hsum_ref = refs[idx]; idx += 1                 # (Bp, H)    f32
        gxf_sc = refs[idx]; idx += 1                       # (TT*Bp, 4H) f32
        gxb_sc = refs[idx]; idx += 1                       # (TT*Bp, 4H) f32
        hc_sc = refs[idx]; idx += 1                        # (4, Bp, H)  f32

        t = pl.program_id(0)
        nt = pl.num_programs(0)

        @pl.when(t == 0)
        def _():
            hc_sc[...] = jnp.zeros_like(hc_sc)

        # ---- hoisted input projection for this time tile, both directions.
        #      Bias folded in here (kept off the serial recurrent path).
        gxf = b_ref[:, :H4]
        gxb = b_ref[:, H4:]
        row0 = 0
        for k in range(num_x):
            fin_k = x_f[k].shape[1]
            w_f = wih_ref[row0:row0 + fin_k, :H4]
            w_b = wih_ref[row0:row0 + fin_k, H4:]
            gxf = gxf + jnp.dot(x_f[k][...], w_f,
                                preferred_element_type=jnp.float32)
            gxb = gxb + jnp.dot(x_b[k][...], w_b,
                                preferred_element_type=jnp.float32)
            row0 += fin_k
        gxf_sc[...] = gxf
        gxb_sc[...] = gxb

        def cell(gates, c_prev):
            # gate order (i, f, o, g): one contiguous sigmoid slab + one tanh
            s = jax.nn.sigmoid(gates[:, :3 * H])
            g = jnp.tanh(gates[:, 3 * H:])
            c = s[:, H:2 * H] * c_prev + s[:, :H] * g
            h = s[:, 2 * H:3 * H] * jnp.tanh(c)
            return h, c

        def step(s, carry):
            h_f, c_f, h_b, c_b = carry
            row_f = pl.multiple_of(s * Bp, Bp)               # fwd local time s
            row_b = pl.multiple_of((TT - 1 - s) * Bp, Bp)    # bwd local time
            # one block-diagonal recurrent matmul for both directions
            h2 = jnp.concatenate([h_f, h_b], axis=-1).astype(jnp.bfloat16)
            hh = jnp.dot(h2, whh_ref[...], preferred_element_type=jnp.float32)
            g_f = gxf_sc[pl.ds(row_f, Bp), :] + hh[:, :H4]
            g_b = gxb_sc[pl.ds(row_b, Bp), :] + hh[:, H4:]
            h_f, c_f = cell(g_f, c_f)
            h_b, c_b = cell(g_b, c_b)
            if not is_last:
                # lane-dense full-width stores (no column offset)
                outf_ref[pl.ds(row_f, Bp), :] = h_f.astype(outf_ref.dtype)
                outb_ref[pl.ds(row_b, Bp), :] = h_b.astype(outb_ref.dtype)
            return h_f, c_f, h_b, c_b

        carry0 = (hc_sc[0], hc_sc[1], hc_sc[2], hc_sc[3])
        h_f, c_f, h_b, c_b = lax.fori_loop(0, TT, step, carry0, unroll=unroll)
        hc_sc[0] = h_f
        hc_sc[1] = c_f
        hc_sc[2] = h_b
        hc_sc[3] = c_b

        @pl.when(t == nt - 1)
        def _():
            hsum = h_f + h_b
            if has_hsum:
                hsum = hsum + hsum_prev_ref[...]
            if is_last:
                # fused classifier head: mean over all 2*num_layers final
                # hidden states, then Linear.
                h_mean = hsum * (1.0 / num_dirs_total)
                logits_ref[...] = (
                    jnp.dot(h_mean, fcw_ref[...],
                            preferred_element_type=jnp.float32)
                    + fcb_ref[...]).astype(logits_ref.dtype)
            else:
                hsum_ref[...] = hsum.astype(hsum_ref.dtype)

    return kernel


# ----------------------------------------------------------------------------
# Wrappers
# ----------------------------------------------------------------------------
def _resident_spec(arr):
    n = arr.ndim
    return pl.BlockSpec(arr.shape, lambda t, _n=n: (0,) * _n)


def _vmem_estimate_bytes(rows, fins, H, Bp):
    bf, f4 = 2, 4
    est = 0
    est += 2 * 2 * sum(rows * f * bf for f in fins)     # x tiles (fwd+bwd, x2 buf)
    est += 2 * 2 * rows * H * bf                        # out_f / out_b (x2 buf)
    est += (sum(fins) * 8 * H + 2 * H * 8 * H) * bf     # resident weights
    est += 8 * H * f4                                   # bias
    est += 2 * rows * 4 * H * f4                        # gx scratch
    est += 8 * Bp * H * f4                              # h/c scratch + hsum/logits
    return est


def _vmem_limit_bytes(rows, fins, H, Bp):
    est = _vmem_estimate_bytes(rows, fins, H, Bp)
    # 2x headroom over the estimate, never below the 32 MiB scoped default,
    # capped at the 64 MiB v7x physical VMEM; shrink time_tile if it won't fit.
    return int(min(max(32 << 20, 2 * est), 64 << 20))


def _choose_time_tile(T, Bp, H, fins, budget=16 << 20):
    for tt in range(T, 0, -1):
        if T % tt == 0 and _vmem_estimate_bytes(tt * Bp, fins, H, Bp) <= budget:
            return tt
    return 1


def bilstm_layer(x_slabs, params, *, seq_len, time_tile, batch_p, hidden,
                 hsum_prev=None, fc=None, num_dirs_total=2):
    """One fused bidirectional LSTM layer over a time-tiled grid.

    x_slabs: tuple of (T*Bp, Fin_k) time-major bf16 feature slabs.
    Returns (out_f, out_b, hsum) for intermediate layers, or logits for the
    last layer (head fused into its epilogue).
    """
    Bp, H, TT = batch_p, hidden, time_tile
    assert seq_len % TT == 0
    nt = seq_len // TT
    rows = TT * Bp
    num_x = len(x_slabs)
    has_hsum = hsum_prev is not None
    is_last = fc is not None
    fins = [int(s.shape[1]) for s in x_slabs]

    kernel = _make_layer_kernel(TT=TT, Bp=Bp, H=H, num_x=num_x,
                                has_hsum=has_hsum, is_last=is_last,
                                num_dirs_total=num_dirs_total)

    args = list(x_slabs) + list(x_slabs) + [params["w_ih"], params["w_hh"],
                                            params["b"]]
    in_specs = (
        [pl.BlockSpec((rows, f), lambda t: (t, 0)) for f in fins]
        + [pl.BlockSpec((rows, f), lambda t: (nt - 1 - t, 0)) for f in fins]
        + [_resident_spec(params["w_ih"]), _resident_spec(params["w_hh"]),
           _resident_spec(params["b"])])
    if has_hsum:
        args.append(hsum_prev)
        in_specs.append(_resident_spec(hsum_prev))
    if is_last:
        fc_w, fc_b = fc
        args += [fc_w, fc_b]
        in_specs += [_resident_spec(fc_w), _resident_spec(fc_b)]
        out_dim = int(fc_w.shape[1])
        out_shape = jax.ShapeDtypeStruct((Bp, out_dim), jnp.float32)
        out_specs = pl.BlockSpec((Bp, out_dim), lambda t: (0, 0))
    else:
        TB = seq_len * Bp
        out_shape = (jax.ShapeDtypeStruct((TB, H), jnp.bfloat16),
                     jax.ShapeDtypeStruct((TB, H), jnp.bfloat16),
                     jax.ShapeDtypeStruct((Bp, H), jnp.float32))
        out_specs = (pl.BlockSpec((rows, H), lambda t: (t, 0)),
                     pl.BlockSpec((rows, H), lambda t: (nt - 1 - t, 0)),
                     pl.BlockSpec((Bp, H), lambda t: (0, 0)))

    scratch = [pltpu.VMEM((rows, 4 * H), jnp.float32),
               pltpu.VMEM((rows, 4 * H), jnp.float32),
               pltpu.VMEM((4, Bp, H), jnp.float32)]

    return pl.pallas_call(
        kernel,
        out_shape=out_shape,
        grid_spec=pltpu.PrefetchScalarGridSpec(
            num_scalar_prefetch=0,
            grid=(nt,),
            in_specs=in_specs,
            out_specs=out_specs,
            scratch_shapes=scratch),
        compiler_params=pltpu.CompilerParams(
            # the time axis carries h/c -> must stay sequential ("arbitrary")
            dimension_semantics=("arbitrary",),
            vmem_limit_bytes=_vmem_limit_bytes(rows, fins, H, Bp)),
    )(*args)


def bilstm_classifier_forward(x, kparams, num_layers, *, time_tile=None):
    """x: (B, T, input_size) batch_first, like the PyTorch module."""
    B, T, _ = x.shape
    H = kparams["layers"][0]["w_hh"].shape[0] // 2

    # pad batch to a sublane multiple (>= 8); padded rows are independent junk
    Bp = max(8, ((B + 7) // 8) * 8)
    if Bp != B:
        x = jnp.pad(x, ((0, Bp - B), (0, 0), (0, 0)))

    # single transpose to time-major; stays (T*Bp, features) between layers
    x2d = jnp.transpose(x, (1, 0, 2)).reshape(T * Bp, -1).astype(jnp.bfloat16)

    slabs = (x2d,)
    hsum = None
    logits = None
    for layer in range(num_layers):
        p = kparams["layers"][layer]
        fins = [int(s.shape[1]) for s in slabs]
        tt = time_tile if time_tile is not None else _choose_time_tile(
            T, Bp, H, fins)
        is_last = layer == num_layers - 1
        if is_last:
            logits = bilstm_layer(slabs, p, seq_len=T, time_tile=tt,
                                  batch_p=Bp, hidden=H, hsum_prev=hsum,
                                  fc=(kparams["fc_w_t"], kparams["fc_b"]),
                                  num_dirs_total=2 * num_layers)
        else:
            out_f, out_b, hsum = bilstm_layer(slabs, p, seq_len=T,
                                              time_tile=tt, batch_p=Bp,
                                              hidden=H, hsum_prev=hsum)
            slabs = (out_f, out_b)
    return logits[:B]


# ----------------------------------------------------------------------------
# Parameters: PyTorch-layout init + kernel-layout preprocessing
# ----------------------------------------------------------------------------
def init_torch_params(key, input_size, hidden_size, num_layers, output_size):
    """PyTorch nn.LSTM / nn.Linear style U(-1/sqrt(H), 1/sqrt(H)) init,
    gate row order (i, f, g, o)."""
    bound = 1.0 / (hidden_size ** 0.5)

    def unif(k, shape):
        return jax.random.uniform(k, shape, jnp.float32, -bound, bound)

    layers = []
    for layer in range(num_layers):
        in_feat = input_size if layer == 0 else 2 * hidden_size
        dirs = []
        for _ in range(2):
            key, k1, k2, k3, k4 = jax.random.split(key, 5)
            dirs.append({
                "w_ih": unif(k1, (4 * hidden_size, in_feat)),
                "w_hh": unif(k2, (4 * hidden_size, hidden_size)),
                "b_ih": unif(k3, (4 * hidden_size,)),
                "b_hh": unif(k4, (4 * hidden_size,)),
            })
        layers.append(dirs)

    key, k1, k2 = jax.random.split(key, 3)
    fc_w = unif(k1, (output_size, hidden_size))
    fc_b = unif(k2, (output_size,))
    return {"layers": layers, "fc_w": fc_w, "fc_b": fc_b}


def prep_kernel_params(tp, hidden_size):
    """Transpose, permute gates (i,f,g,o)->(i,f,o,g), fold biases, fuse both
    directions, build the block-diagonal W_hh, cast MXU inputs to bf16."""
    H = hidden_size
    perm = jnp.concatenate([jnp.arange(0, 2 * H),        # i, f
                            jnp.arange(3 * H, 4 * H),    # o
                            jnp.arange(2 * H, 3 * H)])   # g
    layers = []
    for dirs in tp["layers"]:
        w_ih_cols, whh_blocks, b_cols = [], [], []
        for p in dirs:
            w_ih_cols.append(p["w_ih"][perm].T)                      # (Fin, 4H)
            whh_blocks.append(p["w_hh"][perm].T)                     # (H, 4H)
            b_cols.append((p["b_ih"] + p["b_hh"])[perm])
        w_ih = jnp.concatenate(w_ih_cols, axis=1)                    # (Fin, 8H)
        # block-diagonal recurrent weight: one (2H, 8H) RHS per timestep
        w_hh = jnp.zeros((2 * H, 8 * H), jnp.float32)
        w_hh = w_hh.at[:H, :4 * H].set(whh_blocks[0])
        w_hh = w_hh.at[H:, 4 * H:].set(whh_blocks[1])
        layers.append({
            "w_ih": w_ih.astype(jnp.bfloat16),
            "w_hh": w_hh.astype(jnp.bfloat16),
            "b": jnp.concatenate(b_cols).reshape(1, 8 * H),          # f32
        })
    return {"layers": layers,
            "fc_w_t": tp["fc_w"].T,                                  # (H, O)
            "fc_b": tp["fc_b"].reshape(1, -1)}                       # (1, O)


# ----------------------------------------------------------------------------
# Pure-JAX reference (PyTorch semantics) for the correctness check
# ----------------------------------------------------------------------------
def _ref_dir(x_tm, p):
    H = p["w_hh"].shape[1]
    B = x_tm.shape[1]
    w_ih_t, w_hh_t = p["w_ih"].T, p["w_hh"].T
    b = (p["b_ih"] + p["b_hh"]).reshape(1, -1)

    def step(carry, x_t):
        h, c = carry
        gates = (jnp.dot(x_t, w_ih_t, precision=lax.Precision.HIGHEST)
                 + jnp.dot(h, w_hh_t, precision=lax.Precision.HIGHEST) + b)
        i = jax.nn.sigmoid(gates[:, :H])
        f = jax.nn.sigmoid(gates[:, H:2 * H])
        g = jnp.tanh(gates[:, 2 * H:3 * H])
        o = jax.nn.sigmoid(gates[:, 3 * H:])
        c = f * c + i * g
        h = o * jnp.tanh(c)
        return (h, c), h

    (h, _), out = lax.scan(step, (jnp.zeros((B, H), jnp.float32),
                                  jnp.zeros((B, H), jnp.float32)), x_tm)
    return out, h


def reference_forward(x, tp, num_layers):
    layer_in = x
    h_finals = []
    for layer in range(num_layers):
        outs = []
        for d in range(2):
            p = tp["layers"][layer][d]
            xin = layer_in[:, ::-1] if d == 1 else layer_in
            x_tm = jnp.transpose(xin, (1, 0, 2))
            out_tm, h_last = _ref_dir(x_tm, p)
            out = jnp.transpose(out_tm, (1, 0, 2))
            if d == 1:
                out = out[:, ::-1]
            outs.append(out)
            h_finals.append(h_last)
        layer_in = jnp.concatenate(outs, axis=-1)
    h_mean = jnp.mean(jnp.stack(h_finals, axis=0), axis=0)
    return (jnp.dot(h_mean, tp["fc_w"].T, precision=lax.Precision.HIGHEST)
            + tp["fc_b"])


# ----------------------------------------------------------------------------
if __name__ == "__main__":
    BATCH, SEQ = 2, 8
    INPUT_SIZE, HIDDEN_SIZE, NUM_LAYERS, OUTPUT_SIZE = 16, 32, 2, 4

    key = jax.random.PRNGKey(0)
    key, kx, kp = jax.random.split(key, 3)
    x = jax.random.normal(kx, (BATCH, SEQ, INPUT_SIZE), jnp.float32)

    torch_params = init_torch_params(kp, INPUT_SIZE, HIDDEN_SIZE, NUM_LAYERS,
                                     OUTPUT_SIZE)
    kernel_params = prep_kernel_params(torch_params, HIDDEN_SIZE)

    # time_tile=4 -> a 2-step time grid, exercising the pipelined / carried
    # h-c path even at demo sizes.
    label = bilstm_classifier_forward(x, kernel_params, NUM_LAYERS,
                                      time_tile=4)
    label = jax.block_until_ready(label)

    ref = reference_forward(x, torch_params, NUM_LAYERS)
    assert label.shape == (BATCH, OUTPUT_SIZE)
    max_err = jnp.max(jnp.abs(label - ref))
    # bf16 MXU inputs -> tolerance loosened vs the f32 reference
    assert jnp.allclose(label, ref, atol=2e-2, rtol=2e-2), (
        f"mismatch: max err {max_err}")

    print("KERNEL_OK")
</pallas_src>

<mosaic_0001>
module attributes {stable_mosaic.version = 11 : i64} {
  func.func @kernel(%arg0: i32, %arg1: memref<32x16xbf16, #tpu.memory_space<vmem>>, %arg2: memref<32x16xbf16, #tpu.memory_space<vmem>>, %arg3: memref<16x256xbf16, #tpu.memory_space<vmem>>, %arg4: memref<64x256xbf16, #tpu.memory_space<vmem>>, %arg5: memref<1x256xf32, #tpu.memory_space<vmem>>, %arg6: memref<32x32xbf16, #tpu.memory_space<vmem>>, %arg7: memref<32x32xbf16, #tpu.memory_space<vmem>>, %arg8: memref<8x32xf32, #tpu.memory_space<vmem>>, %arg9: memref<32x128xf32, #tpu.memory_space<vmem>>, %arg10: memref<32x128xf32, #tpu.memory_space<vmem>>, %arg11: memref<4x8x32xf32, #tpu.memory_space<vmem>>) attributes {dimension_semantics = [#tpu.dimension_semantics<arbitrary>], iteration_bounds = array<i64: 2>, scalar_prefetch = 0 : i64, scratch_operands = 3 : i64, tpu.core_type = #tpu.core_type<tc>, window_params = [{transform_indices = @transform_0, window_bounds = array<i64: 32, 16>}, {transform_indices = @transform_1, window_bounds = array<i64: 32, 16>}, {pipeline_mode = #tpu.pipeline_mode<synchronous>, transform_indices = @transform_2, window_bounds = array<i64: 16, 256>}, {pipeline_mode = #tpu.pipeline_mode<synchronous>, transform_indices = @transform_3, window_bounds = array<i64: 64, 256>}, {pipeline_mode = #tpu.pipeline_mode<synchronous>, transform_indices = @transform_4, window_bounds = array<i64: 1, 256>}, {transform_indices = @transform_5, window_bounds = array<i64: 32, 32>}, {transform_indices = @transform_6, window_bounds = array<i64: 32, 32>}, {pipeline_mode = #tpu.pipeline_mode<synchronous>, transform_indices = @transform_7, window_bounds = array<i64: 8, 32>}]} {
    %c0_i32 = arith.constant 0 : i32
    %0 = arith.cmpi eq, %arg0, %c0_i32 : i32
    %1 = arith.extui %0 : i1 to i32
    %c0_i32_0 = arith.constant 0 : i32
    %2 = arith.cmpi ne, %1, %c0_i32_0 : i32
    scf.if %2 {
      %cst_87 = arith.constant 0.000000e+00 : f32
      %260 = vector.broadcast %cst_87 : f32 to vector<4x8x32xf32>
      %c0_88 = arith.constant 0 : index
      %c0_89 = arith.constant 0 : index
      %c0_90 = arith.constant 0 : index
      %261 = vector.load %arg11[%c0_88, %c0_89, %c0_90] : memref<4x8x32xf32, #tpu.memory_space<vmem>>, vector<4x8x32xf32>
      tpu.vector_store %arg11[%c0_88, %c0_89, %c0_90], %260 {strides = array<i32>} : memref<4x8x32xf32, #tpu.memory_space<vmem>>, vector<4x8x32xf32>,
    } else {
    }
    %c0 = arith.constant 0 : index
    %c0_1 = arith.constant 0 : index
    %3 = vector.load %arg5[%c0, %c0_1] : memref<1x256xf32, #tpu.memory_space<vmem>>, vector<1x128xf32>
    %c0_2 = arith.constant 0 : index
    %c128 = arith.constant 128 : index
    %4 = vector.load %arg5[%c0_2, %c128] : memref<1x256xf32, #tpu.memory_space<vmem>>, vector<1x128xf32>
    %c0_3 = arith.constant 0 : index
    %c0_4 = arith.constant 0 : index
    %5 = vector.load %arg3[%c0_3, %c0_4] : memref<16x256xbf16, #tpu.memory_space<vmem>>, vector<16x128xbf16>
    %c0_5 = arith.constant 0 : index
    %c128_6 = arith.constant 128 : index
    %6 = vector.load %arg3[%c0_5, %c128_6] : memref<16x256xbf16, #tpu.memory_space<vmem>>, vector<16x128xbf16>
    %c0_7 = arith.constant 0 : index
    %c0_8 = arith.constant 0 : index
    %7 = vector.load %arg1[%c0_7, %c0_8] : memref<32x16xbf16, #tpu.memory_space<vmem>>, vector<32x16xbf16>
    %cst = arith.constant dense<0.000000e+00> : vector<32x128xf32>
    %8 = tpu.matmul %7, %5, %cst {dimension_numbers = #tpu.dot_dimension_numbers<[1], [0], [0], [1], [0, 0, 1, 1], [], []>} : vector<32x16xbf16>, vector<16x128xbf16>, vector<32x128xf32> -> vector<32x128xf32>
    %9 = vector.broadcast %3 : vector<1x128xf32> to vector<32x128xf32>
    %10 = arith.addf %9, %8 : vector<32x128xf32>
    %c0_9 = arith.constant 0 : index
    %c0_10 = arith.constant 0 : index
    %11 = vector.load %arg2[%c0_9, %c0_10] : memref<32x16xbf16, #tpu.memory_space<vmem>>, vector<32x16xbf16>
    %cst_11 = arith.constant dense<0.000000e+00> : vector<32x128xf32>
    %12 = tpu.matmul %11, %6, %cst_11 {dimension_numbers = #tpu.dot_dimension_numbers<[1], [0], [0], [1], [0, 0, 1, 1], [], []>} : vector<32x16xbf16>, vector<16x128xbf16>, vector<32x128xf32> -> vector<32x128xf32>
    %13 = vector.broadcast %4 : vector<1x128xf32> to vector<32x128xf32>
    %14 = arith.addf %13, %12 : vector<32x128xf32>
    %c0_12 = arith.constant 0 : index
    %c0_13 = arith.constant 0 : index
    %15 = vector.load %arg9[%c0_12, %c0_13] : memref<32x128xf32, #tpu.memory_space<vmem>>, vector<32x128xf32>
    tpu.vector_store %arg9[%c0_12, %c0_13], %10 {strides = array<i32>} : memref<32x128xf32, #tpu.memory_space<vmem>>, vector<32x128xf32>,
    %c0_14 = arith.constant 0 : index
    %c0_15 = arith.constant 0 : index
    %16 = vector.load %arg10[%c0_14, %c0_15] : memref<32x128xf32, #tpu.memory_space<vmem>>, vector<32x128xf32>
    tpu.vector_store %arg10[%c0_14, %c0_15], %14 {strides = array<i32>} : memref<32x128xf32, #tpu.memory_space<vmem>>, vector<32x128xf32>,
    %c0_16 = arith.constant 0 : index
    %c0_17 = arith.constant 0 : index
    %c0_18 = arith.constant 0 : index
    %17 = vector.load %arg11[%c0_16, %c0_17, %c0_18] : memref<4x8x32xf32, #tpu.memory_space<vmem>>, vector<1x8x32xf32>
    %18 = vector.shape_cast %17 : vector<1x8x32xf32> to vector<8x32xf32>
    %c1 = arith.constant 1 : index
    %c0_19 = arith.constant 0 : index
    %c0_20 = arith.constant 0 : index
    %19 = vector.load %arg11[%c1, %c0_19, %c0_20] : memref<4x8x32xf32, #tpu.memory_space<vmem>>, vector<1x8x32xf32>
    %20 = vector.shape_cast %19 : vector<1x8x32xf32> to vector<8x32xf32>
    %c2 = arith.constant 2 : index
    %c0_21 = arith.constant 0 : index
    %c0_22 = arith.constant 0 : index
    %21 = vector.load %arg11[%c2, %c0_21, %c0_22] : memref<4x8x32xf32, #tpu.memory_space<vmem>>, vector<1x8x32xf32>
    %22 = vector.shape_cast %21 : vector<1x8x32xf32> to vector<8x32xf32>
    %c3 = arith.constant 3 : index
    %c0_23 = arith.constant 0 : index
    %c0_24 = arith.constant 0 : index
    %23 = vector.load %arg11[%c3, %c0_23, %c0_24] : memref<4x8x32xf32, #tpu.memory_space<vmem>>, vector<1x8x32xf32>
    %24 = vector.shape_cast %23 : vector<1x8x32xf32> to vector<8x32xf32>
    %c0_i32_25 = arith.constant 0 : i32
    %c8_i32 = arith.constant 8 : i32
    %25 = arith.muli %c0_i32_25, %c8_i32 : i32
    %26 = tpu.assume_multiple %25, 8 : i32
    %c3_i32 = arith.constant 3 : i32
    %27 = arith.subi %c3_i32, %c0_i32_25 : i32
    %c8_i32_26 = arith.constant 8 : i32
    %28 = arith.muli %27, %c8_i32_26 : i32
    %29 = tpu.assume_multiple %28, 8 : i32
    %30 = tpu.concatenate %18, %22 in 1 : vector<8x32xf32>, vector<8x32xf32> -> vector<8x64xf32>
    %31 = arith.truncf %30 : vector<8x64xf32> to vector<8x64xbf16>
    %c0_27 = arith.constant 0 : index
    %c0_28 = arith.constant 0 : index
    %32 = vector.load %arg4[%c0_27, %c0_28] : memref<64x256xbf16, #tpu.memory_space<vmem>>, vector<64x256xbf16>
    %cst_29 = arith.constant dense<0.000000e+00> : vector<8x256xf32>
    %33 = tpu.matmul %31, %32, %cst_29 {dimension_numbers = #tpu.dot_dimension_numbers<[1], [0], [0], [1], [0, 0, 1, 1], [], []>} : vector<8x64xbf16>, vector<64x256xbf16>, vector<8x256xf32> -> vector<8x256xf32>
    %34 = arith.index_cast %26 : i32 to index
    %c0_30 = arith.constant 0 : index
    %35 = vector.load %arg9[%34, %c0_30] : memref<32x128xf32, #tpu.memory_space<vmem>>, vector<8x128xf32>
    %36 = vector.extract_strided_slice %33 {offsets = [0, 0], sizes = [8, 128], strides = [1, 1]} : vector<8x256xf32> to vector<8x128xf32>
    %37 = arith.addf %35, %36 : vector<8x128xf32>
    %38 = arith.index_cast %29 : i32 to index
    %c0_31 = arith.constant 0 : index
    %39 = vector.load %arg10[%38, %c0_31] : memref<32x128xf32, #tpu.memory_space<vmem>>, vector<8x128xf32>
    %40 = vector.extract_strided_slice %33 {offsets = [0, 128], sizes = [8, 128], strides = [1, 1]} : vector<8x256xf32> to vector<8x128xf32>
    %41 = arith.addf %39, %40 : vector<8x128xf32>
    %42 = vector.extract_strided_slice %37 {offsets = [0, 0], sizes = [8, 96], strides = [1, 1]} : vector<8x128xf32> to vector<8x96xf32>
    %43 = arith.negf %42 : vector<8x96xf32>
    %44 = math.exp %43 : vector<8x96xf32>
    %cst_32 = arith.constant 1.000000e+00 : f32
    %45 = vector.broadcast %cst_32 : f32 to vector<8x96xf32>
    %46 = arith.addf %45, %44 : vector<8x96xf32>
    %47 = arith.divf %45, %46 : vector<8x96xf32>
    %48 = vector.extract_strided_slice %37 {offsets = [0, 96], sizes = [8, 32], strides = [1, 1]} : vector<8x128xf32> to vector<8x32xf32>
    %49 = math.tanh %48 : vector<8x32xf32>
    %50 = vector.extract_strided_slice %47 {offsets = [0, 32], sizes = [8, 32], strides = [1, 1]} : vector<8x96xf32> to vector<8x32xf32>
    %51 = arith.mulf %50, %20 : vector<8x32xf32>
    %52 = vector.extract_strided_slice %47 {offsets = [0, 0], sizes = [8, 32], strides = [1, 1]} : vector<8x96xf32> to vector<8x32xf32>
    %53 = arith.mulf %52, %49 : vector<8x32xf32>
    %54 = arith.addf %51, %53 : vector<8x32xf32>
    %55 = vector.extract_strided_slice %47 {offsets = [0, 64], sizes = [8, 32], strides = [1, 1]} : vector<8x96xf32> to vector<8x32xf32>
    %56 = math.tanh %54 : vector<8x32xf32>
    %57 = arith.mulf %55, %56 : vector<8x32xf32>
    %58 = vector.extract_strided_slice %41 {offsets = [0, 0], sizes = [8, 96], strides = [1, 1]} : vector<8x128xf32> to vector<8x96xf32>
    %59 = arith.negf %58 : vector<8x96xf32>
    %60 = math.exp %59 : vector<8x96xf32>
    %cst_33 = arith.constant 1.000000e+00 : f32
    %61 = vector.broadcast %cst_33 : f32 to vector<8x96xf32>
    %62 = arith.addf %61, %60 : vector<8x96xf32>
    %63 = arith.divf %61, %62 : vector<8x96xf32>
    %64 = vector.extract_strided_slice %41 {offsets = [0, 96], sizes = [8, 32], strides = [1, 1]} : vector<8x128xf32> to vector<8x32xf32>
    %65 = math.tanh %64 : vector<8x32xf32>
    %66 = vector.extract_strided_slice %63 {offsets = [0, 32], sizes = [8, 32], strides = [1, 1]} : vector<8x96xf32> to vector<8x32xf32>
    %67 = arith.mulf %66, %24 : vector<8x32xf32>
    %68 = vector.extract_strided_slice %63 {offsets = [0, 0], sizes = [8, 32], strides = [1, 1]} : vector<8x96xf32> to vector<8x32xf32>
    %69 = arith.mulf %68, %65 : vector<8x32xf32>
    %70 = arith.addf %67, %69 : vector<8x32xf32>
    %71 = vector.extract_strided_slice %63 {offsets = [0, 64], sizes = [8, 32], strides = [1, 1]} : vector<8x96xf32> to vector<8x32xf32>
    %72 = math.tanh %70 : vector<8x32xf32>
    %73 = arith.mulf %71, %72 : vector<8x32xf32>
    %74 = arith.truncf %57 : vector<8x32xf32> to vector<8x32xbf16>
    %75 = arith.index_cast %26 : i32 to index
    %c0_34 = arith.constant 0 : index
    %76 = vector.load %arg6[%75, %c0_34] : memref<32x32xbf16, #tpu.memory_space<vmem>>, vector<8x32xbf16>
    tpu.vector_store %arg6[%75, %c0_34], %74 {strides = array<i32>} : memref<32x32xbf16, #tpu.memory_space<vmem>>, vector<8x32xbf16>,
    %77 = arith.truncf %73 : vector<8x32xf32> to vector<8x32xbf16>
    %78 = arith.index_cast %29 : i32 to index
    %c0_35 = arith.constant 0 : index
    %79 = vector.load %arg7[%78, %c0_35] : memref<32x32xbf16, #tpu.memory_space<vmem>>, vector<8x32xbf16>
    tpu.vector_store %arg7[%78, %c0_35], %77 {strides = array<i32>} : memref<32x32xbf16, #tpu.memory_space<vmem>>, vector<8x32xbf16>,
    %c1_i32 = arith.constant 1 : i32
    %c8_i32_36 = arith.constant 8 : i32
    %80 = arith.muli %c1_i32, %c8_i32_36 : i32
    %81 = tpu.assume_multiple %80, 8 : i32
    %c3_i32_37 = arith.constant 3 : i32
    %82 = arith.subi %c3_i32_37, %c1_i32 : i32
    %c8_i32_38 = arith.constant 8 : i32
    %83 = arith.muli %82, %c8_i32_38 : i32
    %84 = tpu.assume_multiple %83, 8 : i32
    %85 = tpu.concatenate %57, %73 in 1 : vector<8x32xf32>, vector<8x32xf32> -> vector<8x64xf32>
    %86 = arith.truncf %85 : vector<8x64xf32> to vector<8x64xbf16>
    %c0_39 = arith.constant 0 : index
    %c0_40 = arith.constant 0 : index
    %87 = vector.load %arg4[%c0_39, %c0_40] : memref<64x256xbf16, #tpu.memory_space<vmem>>, vector<64x256xbf16>
    %cst_41 = arith.constant dense<0.000000e+00> : vector<8x256xf32>
    %88 = tpu.matmul %86, %87, %cst_41 {dimension_numbers = #tpu.dot_dimension_numbers<[1], [0], [0], [1], [0, 0, 1, 1], [], []>} : vector<8x64xbf16>, vector<64x256xbf16>, vector<8x256xf32> -> vector<8x256xf32>
    %89 = arith.index_cast %81 : i32 to index
    %c0_42 = arith.constant 0 : index
    %90 = vector.load %arg9[%89, %c0_42] : memref<32x128xf32, #tpu.memory_space<vmem>>, vector<8x128xf32>
    %91 = vector.extract_strided_slice %88 {offsets = [0, 0], sizes = [8, 128], strides = [1, 1]} : vector<8x256xf32> to vector<8x128xf32>
    %92 = arith.addf %90, %91 : vector<8x128xf32>
    %93 = arith.index_cast %84 : i32 to index
    %c0_43 = arith.constant 0 : index
    %94 = vector.load %arg10[%93, %c0_43] : memref<32x128xf32, #tpu.memory_space<vmem>>, vector<8x128xf32>
    %95 = vector.extract_strided_slice %88 {offsets = [0, 128], sizes = [8, 128], strides = [1, 1]} : vector<8x256xf32> to vector<8x128xf32>
    %96 = arith.addf %94, %95 : vector<8x128xf32>
    %97 = vector.extract_strided_slice %92 {offsets = [0, 0], sizes = [8, 96], strides = [1, 1]} : vector<8x128xf32> to vector<8x96xf32>
    %98 = arith.negf %97 : vector<8x96xf32>
    %99 = math.exp %98 : vector<8x96xf32>
    %cst_44 = arith.constant 1.000000e+00 : f32
    %100 = vector.broadcast %cst_44 : f32 to vector<8x96xf32>
    %101 = arith.addf %100, %99 : vector<8x96xf32>
    %102 = arith.divf %100, %101 : vector<8x96xf32>
    %103 = vector.extract_strided_slice %92 {offsets = [0, 96], sizes = [8, 32], strides = [1, 1]} : vector<8x128xf32> to vector<8x32xf32>
    %104 = math.tanh %103 : vector<8x32xf32>
    %105 = vector.extract_strided_slice %102 {offsets = [0, 32], sizes = [8, 32], strides = [1, 1]} : vector<8x96xf32> to vector<8x32xf32>
    %106 = arith.mulf %105, %54 : vector<8x32xf32>
    %107 = vector.extract_strided_slice %102 {offsets = [0, 0], sizes = [8, 32], strides = [1, 1]} : vector<8x96xf32> to vector<8x32xf32>
    %108 = arith.mulf %107, %104 : vector<8x32xf32>
    %109 = arith.addf %106, %108 : vector<8x32xf32>
    %110 = vector.extract_strided_slice %102 {offsets = [0, 64], sizes = [8, 32], strides = [1, 1]} : vector<8x96xf32> to vector<8x32xf32>
    %111 = math.tanh %109 : vector<8x32xf32>
    %112 = arith.mulf %110, %111 : vector<8x32xf32>
    %113 = vector.extract_strided_slice %96 {offsets = [0, 0], sizes = [8, 96], strides = [1, 1]} : vector<8x128xf32> to vector<8x96xf32>
    %114 = arith.negf %113 : vector<8x96xf32>
    %115 = math.exp %114 : vector<8x96xf32>
    %cst_45 = arith.constant 1.000000e+00 : f32
    %116 = vector.broadcast %cst_45 : f32 to vector<8x96xf32>
    %117 = arith.addf %116, %115 : vector<8x96xf32>
    %118 = arith.divf %116, %117 : vector<8x96xf32>
    %119 = vector.extract_strided_slice %96 {offsets = [0, 96], sizes = [8, 32], strides = [1, 1]} : vector<8x128xf32> to vector<8x32xf32>
    %120 = math.tanh %119 : vector<8x32xf32>
    %121 = vector.extract_strided_slice %118 {offsets = [0, 32], sizes = [8, 32], strides = [1, 1]} : vector<8x96xf32> to vector<8x32xf32>
    %122 = arith.mulf %121, %70 : vector<8x32xf32>
    %123 = vector.extract_strided_slice %118 {offsets = [0, 0], sizes = [8, 32], strides = [1, 1]} : vector<8x96xf32> to vector<8x32xf32>
    %124 = arith.mulf %123, %120 : vector<8x32xf32>
    %125 = arith.addf %122, %124 : vector<8x32xf32>
    %126 = vector.extract_strided_slice %118 {offsets = [0, 64], sizes = [8, 32], strides = [1, 1]} : vector<8x96xf32> to vector<8x32xf32>
    %127 = math.tanh %125 : vector<8x32xf32>
    %128 = arith.mulf %126, %127 : vector<8x32xf32>
    %129 = arith.truncf %112 : vector<8x32xf32> to vector<8x32xbf16>
    %130 = arith.index_cast %81 : i32 to index
    %c0_46 = arith.constant 0 : index
    %131 = vector.load %arg6[%130, %c0_46] : memref<32x32xbf16, #tpu.memory_space<vmem>>, vector<8x32xbf16>
    tpu.vector_store %arg6[%130, %c0_46], %129 {strides = array<i32>} : memref<32x32xbf16, #tpu.memory_space<vmem>>, vector<8x32xbf16>,
    %132 = arith.truncf %128 : vector<8x32xf32> to vector<8x32xbf16>
    %133 = arith.index_cast %84 : i32 to index
    %c0_47 = arith.constant 0 : index
    %134 = vector.load %arg7[%133, %c0_47] : memref<32x32xbf16, #tpu.memory_space<vmem>>, vector<8x32xbf16>
    tpu.vector_store %arg7[%133, %c0_47], %132 {strides = array<i32>} : memref<32x32xbf16, #tpu.memory_space<vmem>>, vector<8x32xbf16>,
    %c2_i32 = arith.constant 2 : i32
    %c8_i32_48 = arith.constant 8 : i32
    %135 = arith.muli %c2_i32, %c8_i32_48 : i32
    %136 = tpu.assume_multiple %135, 8 : i32
    %c3_i32_49 = arith.constant 3 : i32
    %137 = arith.subi %c3_i32_49, %c2_i32 : i32
    %c8_i32_50 = arith.constant 8 : i32
    %138 = arith.muli %137, %c8_i32_50 : i32
    %139 = tpu.assume_multiple %138, 8 : i32
    %140 = tpu.concatenate %112, %128 in 1 : vector<8x32xf32>, vector<8x32xf32> -> vector<8x64xf32>
    %141 = arith.truncf %140 : vector<8x64xf32> to vector<8x64xbf16>
    %c0_51 = arith.constant 0 : index
    %c0_52 = arith.constant 0 : index
    %142 = vector.load %arg4[%c0_51, %c0_52] : memref<64x256xbf16, #tpu.memory_space<vmem>>, vector<64x256xbf16>
    %cst_53 = arith.constant dense<0.000000e+00> : vector<8x256xf32>
    %143 = tpu.matmul %141, %142, %cst_53 {dimension_numbers = #tpu.dot_dimension_numbers<[1], [0], [0], [1], [0, 0, 1, 1], [], []>} : vector<8x64xbf16>, vector<64x256xbf16>, vector<8x256xf32> -> vector<8x256xf32>
    %144 = arith.index_cast %136 : i32 to index
    %c0_54 = arith.constant 0 : index
    %145 = vector.load %arg9[%144, %c0_54] : memref<32x128xf32, #tpu.memory_space<vmem>>, vector<8x128xf32>
    %146 = vector.extract_strided_slice %143 {offsets = [0, 0], sizes = [8, 128], strides = [1, 1]} : vector<8x256xf32> to vector<8x128xf32>
    %147 = arith.addf %145, %146 : vector<8x128xf32>
    %148 = arith.index_cast %139 : i32 to index
    %c0_55 = arith.constant 0 : index
    %149 = vector.load %arg10[%148, %c0_55] : memref<32x128xf32, #tpu.memory_space<vmem>>, vector<8x128xf32>
    %150 = vector.extract_strided_slice %143 {offsets = [0, 128], sizes = [8, 128], strides = [1, 1]} : vector<8x256xf32> to vector<8x128xf32>
    %151 = arith.addf %149, %150 : vector<8x128xf32>
    %152 = vector.extract_strided_slice %147 {offsets = [0, 0], sizes = [8, 96], strides = [1, 1]} : vector<8x128xf32> to vector<8x96xf32>
    %153 = arith.negf %152 : vector<8x96xf32>
    %154 = math.exp %153 : vector<8x96xf32>
    %cst_56 = arith.constant 1.000000e+00 : f32
    %155 = vector.broadcast %cst_56 : f32 to vector<8x96xf32>
    %156 = arith.addf %155, %154 : vector<8x96xf32>
    %157 = arith.divf %155, %156 : vector<8x96xf32>
    %158 = vector.extract_strided_slice %147 {offsets = [0, 96], sizes = [8, 32], strides = [1, 1]} : vector<8x128xf32> to vector<8x32xf32>
    %159 = math.tanh %158 : vector<8x32xf32>
    %160 = vector.extract_strided_slice %157 {offsets = [0, 32], sizes = [8, 32], strides = [1, 1]} : vector<8x96xf32> to vector<8x32xf32>
    %161 = arith.mulf %160, %109 : vector<8x32xf32>
    %162 = vector.extract_strided_slice %157 {offsets = [0, 0], sizes = [8, 32], strides = [1, 1]} : vector<8x96xf32> to vector<8x32xf32>
    %163 = arith.mulf %162, %159 : vector<8x32xf32>
    %164 = arith.addf %161, %163 : vector<8x32xf32>
    %165 = vector.extract_strided_slice %157 {offsets = [0, 64], sizes = [8, 32], strides = [1, 1]} : vector<8x96xf32> to vector<8x32xf32>
    %166 = math.tanh %164 : vector<8x32xf32>
    %167 = arith.mulf %165, %166 : vector<8x32xf32>
    %168 = vector.extract_strided_slice %151 {offsets = [0, 0], sizes = [8, 96], strides = [1, 1]} : vector<8x128xf32> to vector<8x96xf32>
    %169 = arith.negf %168 : vector<8x96xf32>
    %170 = math.exp %169 : vector<8x96xf32>
    %cst_57 = arith.constant 1.000000e+00 : f32
    %171 = vector.broadcast %cst_57 : f32 to vector<8x96xf32>
    %172 = arith.addf %171, %170 : vector<8x96xf32>
    %173 = arith.divf %171, %172 : vector<8x96xf32>
    %174 = vector.extract_strided_slice %151 {offsets = [0, 96], sizes = [8, 32], strides = [1, 1]} : vector<8x128xf32> to vector<8x32xf32>
    %175 = math.tanh %174 : vector<8x32xf32>
    %176 = vector.extract_strided_slice %173 {offsets = [0, 32], sizes = [8, 32], strides = [1, 1]} : vector<8x96xf32> to vector<8x32xf32>
    %177 = arith.mulf %176, %125 : vector<8x32xf32>
    %178 = vector.extract_strided_slice %173 {offsets = [0, 0], sizes = [8, 32], strides = [1, 1]} : vector<8x96xf32> to vector<8x32xf32>
    %179 = arith.mulf %178, %175 : vector<8x32xf32>
    %180 = arith.addf %177, %179 : vector<8x32xf32>
    %181 = vector.extract_strided_slice %173 {offsets = [0, 64], sizes = [8, 32], strides = [1, 1]} : vector<8x96xf32> to vector<8x32xf32>
    %182 = math.tanh %180 : vector<8x32xf32>
    %183 = arith.mulf %181, %182 : vector<8x32xf32>
    %184 = arith.truncf %167 : vector<8x32xf32> to vector<8x32xbf16>
    %185 = arith.index_cast %136 : i32 to index
    %c0_58 = arith.constant 0 : index
    %186 = vector.load %arg6[%185, %c0_58] : memref<32x32xbf16, #tpu.memory_space<vmem>>, vector<8x32xbf16>
    tpu.vector_store %arg6[%185, %c0_58], %184 {strides = array<i32>} : memref<32x32xbf16, #tpu.memory_space<vmem>>, vector<8x32xbf16>,
    %187 = arith.truncf %183 : vector<8x32xf32> to vector<8x32xbf16>
    %188 = arith.index_cast %139 : i32 to index
    %c0_59 = arith.constant 0 : index
    %189 = vector.load %arg7[%188, %c0_59] : memref<32x32xbf16, #tpu.memory_space<vmem>>, vector<8x32xbf16>
    tpu.vector_store %arg7[%188, %c0_59], %187 {strides = array<i32>} : memref<32x32xbf16, #tpu.memory_space<vmem>>, vector<8x32xbf16>,
    %c3_i32_60 = arith.constant 3 : i32
    %c8_i32_61 = arith.constant 8 : i32
    %190 = arith.muli %c3_i32_60, %c8_i32_61 : i32
    %191 = tpu.assume_multiple %190, 8 : i32
    %c3_i32_62 = arith.constant 3 : i32
    %192 = arith.subi %c3_i32_62, %c3_i32_60 : i32
    %c8_i32_63 = arith.constant 8 : i32
    %193 = arith.muli %192, %c8_i32_63 : i32
    %194 = tpu.assume_multiple %193, 8 : i32
    %195 = tpu.concatenate %167, %183 in 1 : vector<8x32xf32>, vector<8x32xf32> -> vector<8x64xf32>
    %196 = arith.truncf %195 : vector<8x64xf32> to vector<8x64xbf16>
    %c0_64 = arith.constant 0 : index
    %c0_65 = arith.constant 0 : index
    %197 = vector.load %arg4[%c0_64, %c0_65] : memref<64x256xbf16, #tpu.memory_space<vmem>>, vector<64x256xbf16>
    %cst_66 = arith.constant dense<0.000000e+00> : vector<8x256xf32>
    %198 = tpu.matmul %196, %197, %cst_66 {dimension_numbers = #tpu.dot_dimension_numbers<[1], [0], [0], [1], [0, 0, 1, 1], [], []>} : vector<8x64xbf16>, vector<64x256xbf16>, vector<8x256xf32> -> vector<8x256xf32>
    %199 = arith.index_cast %191 : i32 to index
    %c0_67 = arith.constant 0 : index
    %200 = vector.load %arg9[%199, %c0_67] : memref<32x128xf32, #tpu.memory_space<vmem>>, vector<8x128xf32>
    %201 = vector.extract_strided_slice %198 {offsets = [0, 0], sizes = [8, 128], strides = [1, 1]} : vector<8x256xf32> to vector<8x128xf32>
    %202 = arith.addf %200, %201 : vector<8x128xf32>
    %203 = arith.index_cast %194 : i32 to index
    %c0_68 = arith.constant 0 : index
    %204 = vector.load %arg10[%203, %c0_68] : memref<32x128xf32, #tpu.memory_space<vmem>>, vector<8x128xf32>
    %205 = vector.extract_strided_slice %198 {offsets = [0, 128], sizes = [8, 128], strides = [1, 1]} : vector<8x256xf32> to vector<8x128xf32>
    %206 = arith.addf %204, %205 : vector<8x128xf32>
    %207 = vector.extract_strided_slice %202 {offsets = [0, 0], sizes = [8, 96], strides = [1, 1]} : vector<8x128xf32> to vector<8x96xf32>
    %208 = arith.negf %207 : vector<8x96xf32>
    %209 = math.exp %208 : vector<8x96xf32>
    %cst_69 = arith.constant 1.000000e+00 : f32
    %210 = vector.broadcast %cst_69 : f32 to vector<8x96xf32>
    %211 = arith.addf %210, %209 : vector<8x96xf32>
    %212 = arith.divf %210, %211 : vector<8x96xf32>
    %213 = vector.extract_strided_slice %202 {offsets = [0, 96], sizes = [8, 32], strides = [1, 1]} : vector<8x128xf32> to vector<8x32xf32>
    %214 = math.tanh %213 : vector<8x32xf32>
    %215 = vector.extract_strided_slice %212 {offsets = [0, 32], sizes = [8, 32], strides = [1, 1]} : vector<8x96xf32> to vector<8x32xf32>
    %216 = arith.mulf %215, %164 : vector<8x32xf32>
    %217 = vector.extract_strided_slice %212 {offsets = [0, 0], sizes = [8, 32], strides = [1, 1]} : vector<8x96xf32> to vector<8x32xf32>
    %218 = arith.mulf %217, %214 : vector<8x32xf32>
    %219 = arith.addf %216, %218 : vector<8x32xf32>
    %220 = vector.extract_strided_slice %212 {offsets = [0, 64], sizes = [8, 32], strides = [1, 1]} : vector<8x96xf32> to vector<8x32xf32>
    %221 = math.tanh %219 : vector<8x32xf32>
    %222 = arith.mulf %220, %221 : vector<8x32xf32>
    %223 = vector.extract_strided_slice %206 {offsets = [0, 0], sizes = [8, 96], strides = [1, 1]} : vector<8x128xf32> to vector<8x96xf32>
    %224 = arith.negf %223 : vector<8x96xf32>
    %225 = math.exp %224 : vector<8x96xf32>
    %cst_70 = arith.constant 1.000000e+00 : f32
    %226 = vector.broadcast %cst_70 : f32 to vector<8x96xf32>
    %227 = arith.addf %226, %225 : vector<8x96xf32>
    %228 = arith.divf %226, %227 : vector<8x96xf32>
    %229 = vector.extract_strided_slice %206 {offsets = [0, 96], sizes = [8, 32], strides = [1, 1]} : vector<8x128xf32> to vector<8x32xf32>
    %230 = math.tanh %229 : vector<8x32xf32>
    %231 = vector.extract_strided_slice %228 {offsets = [0, 32], sizes = [8, 32], strides = [1, 1]} : vector<8x96xf32> to vector<8x32xf32>
    %232 = arith.mulf %231, %180 : vector<8x32xf32>
    %233 = vector.extract_strided_slice %228 {offsets = [0, 0], sizes = [8, 32], strides = [1, 1]} : vector<8x96xf32> to vector<8x32xf32>
    %234 = arith.mulf %233, %230 : vector<8x32xf32>
    %235 = arith.addf %232, %234 : vector<8x32xf32>
    %236 = vector.extract_strided_slice %228 {offsets = [0, 64], sizes = [8, 32], strides = [1, 1]} : vector<8x96xf32> to vector<8x32xf32>
    %237 = math.tanh %235 : vector<8x32xf32>
    %238 = arith.mulf %236, %237 : vector<8x32xf32>
    %239 = arith.truncf %222 : vector<8x32xf32> to vector<8x32xbf16>
    %240 = arith.index_cast %191 : i32 to index
    %c0_71 = arith.constant 0 : index
    %241 = vector.load %arg6[%240, %c0_71] : memref<32x32xbf16, #tpu.memory_space<vmem>>, vector<8x32xbf16>
    tpu.vector_store %arg6[%240, %c0_71], %239 {strides = array<i32>} : memref<32x32xbf16, #tpu.memory_space<vmem>>, vector<8x32xbf16>,
    %242 = arith.truncf %238 : vector<8x32xf32> to vector<8x32xbf16>
    %243 = arith.index_cast %194 : i32 to index
    %c0_72 = arith.constant 0 : index
    %244 = vector.load %arg7[%243, %c0_72] : memref<32x32xbf16, #tpu.memory_space<vmem>>, vector<8x32xbf16>
    tpu.vector_store %arg7[%243, %c0_72], %242 {strides = array<i32>} : memref<32x32xbf16, #tpu.memory_space<vmem>>, vector<8x32xbf16>,
    %c4_i32 = arith.constant 4 : i32
    %c0_73 = arith.constant 0 : index
    %c0_74 = arith.constant 0 : index
    %c0_75 = arith.constant 0 : index
    %245 = vector.load %arg11[%c0_73, %c0_74, %c0_75] : memref<4x8x32xf32, #tpu.memory_space<vmem>>, vector<1x8x32xf32>
    %246 = vector.shape_cast %245 : vector<1x8x32xf32> to vector<8x32xf32>
    %247 = vector.shape_cast %222 : vector<8x32xf32> to vector<1x8x32xf32>
    tpu.vector_store %arg11[%c0_73, %c0_74, %c0_75], %247 {strides = array<i32>} : memref<4x8x32xf32, #tpu.memory_space<vmem>>, vector<1x8x32xf32>,
    %c1_76 = arith.constant 1 : index
    %c0_77 = arith.constant 0 : index
    %c0_78 = arith.constant 0 : index
    %248 = vector.load %arg11[%c1_76, %c0_77, %c0_78] : memref<4x8x32xf32, #tpu.memory_space<vmem>>, vector<1x8x32xf32>
    %249 = vector.shape_cast %248 : vector<1x8x32xf32> to vector<8x32xf32>
    %250 = vector.shape_cast %219 : vector<8x32xf32> to vector<1x8x32xf32>
    tpu.vector_store %arg11[%c1_76, %c0_77, %c0_78], %250 {strides = array<i32>} : memref<4x8x32xf32, #tpu.memory_space<vmem>>, vector<1x8x32xf32>,
    %c2_79 = arith.constant 2 : index
    %c0_80 = arith.constant 0 : index
    %c0_81 = arith.constant 0 : index
    %251 = vector.load %arg11[%c2_79, %c0_80, %c0_81] : memref<4x8x32xf32, #tpu.memory_space<vmem>>, vector<1x8x32xf32>
    %252 = vector.shape_cast %251 : vector<1x8x32xf32> to vector<8x32xf32>
    %253 = vector.shape_cast %238 : vector<8x32xf32> to vector<1x8x32xf32>
    tpu.vector_store %arg11[%c2_79, %c0_80, %c0_81], %253 {strides = array<i32>} : memref<4x8x32xf32, #tpu.memory_space<vmem>>, vector<1x8x32xf32>,
    %c3_82 = arith.constant 3 : index
    %c0_83 = arith.constant 0 : index
    %c0_84 = arith.constant 0 : index
    %254 = vector.load %arg11[%c3_82, %c0_83, %c0_84] : memref<4x8x32xf32, #tpu.memory_space<vmem>>, vector<1x8x32xf32>
    %255 = vector.shape_cast %254 : vector<1x8x32xf32> to vector<8x32xf32>
    %256 = vector.shape_cast %235 : vector<8x32xf32> to vector<1x8x32xf32>
    tpu.vector_store %arg11[%c3_82, %c0_83, %c0_84], %256 {strides = array<i32>} : memref<4x8x32xf32, #tpu.memory_space<vmem>>, vector<1x8x32xf32>,
    %c1_i32_85 = arith.constant 1 : i32
    %257 = arith.cmpi eq, %arg0, %c1_i32_85 : i32
    %258 = arith.extui %257 : i1 to i32
    %c0_i32_86 = arith.constant 0 : i32
    %259 = arith.cmpi ne, %258, %c0_i32_86 : i32
    scf.if %259 {
      %260 = arith.addf %222, %238 : vector<8x32xf32>
      %c0_87 = arith.constant 0 : index
      %c0_88 = arith.constant 0 : index
      %261 = vector.load %arg8[%c0_87, %c0_88] : memref<8x32xf32, #tpu.memory_space<vmem>>, vector<8x32xf32>
      tpu.vector_store %arg8[%c0_87, %c0_88], %260 {strides = array<i32>} : memref<8x32xf32, #tpu.memory_space<vmem>>, vector<8x32xf32>,
    } else {
    }
    return
  }
  func.func @transform_0(%arg0: i32) -> (i32, i32) {
    %c0_i32 = arith.constant 0 : i32
    %c0_i32_0 = arith.constant 0 : i32
    return %arg0, %c0_i32 : i32, i32
  }
  func.func @transform_1(%arg0: i32) -> (i32, i32) {
    %c1_i32 = arith.constant 1 : i32
    %0 = arith.subi %c1_i32, %arg0 : i32
    %c0_i32 = arith.constant 0 : i32
    %c0_i32_0 = arith.constant 0 : i32
    return %0, %c0_i32 : i32, i32
  }
  func.func @transform_2(%arg0: i32) -> (i32, i32) {
    %c0_i32 = arith.constant 0 : i32
    %c0_i32_0 = arith.constant 0 : i32
    %c0_i32_1 = arith.constant 0 : i32
    return %c0_i32, %c0_i32_0 : i32, i32
  }
  func.func @transform_3(%arg0: i32) -> (i32, i32) {
    %c0_i32 = arith.constant 0 : i32
    %c0_i32_0 = arith.constant 0 : i32
    %c0_i32_1 = arith.constant 0 : i32
    return %c0_i32, %c0_i32_0 : i32, i32
  }
  func.func @transform_4(%arg0: i32) -> (i32, i32) {
    %c0_i32 = arith.constant 0 : i32
    %c0_i32_0 = arith.constant 0 : i32
    %c0_i32_1 = arith.constant 0 : i32
    return %c0_i32, %c0_i32_0 : i32, i32
  }
  func.func @transform_5(%arg0: i32) -> (i32, i32) {
    %c0_i32 = arith.constant 0 : i32
    %c0_i32_0 = arith.constant 0 : i32
    return %arg0, %c0_i32 : i32, i32
  }
  func.func @transform_6(%arg0: i32) -> (i32, i32) {
    %c1_i32 = arith.constant 1 : i32
    %0 = arith.subi %c1_i32, %arg0 : i32
    %c0_i32 = arith.constant 0 : i32
    %c0_i32_0 = arith.constant 0 : i32
    return %0, %c0_i32 : i32, i32
  }
  func.func @transform_7(%arg0: i32) -> (i32, i32) {
    %c0_i32 = arith.constant 0 : i32
    %c0_i32_0 = arith.constant 0 : i32
    %c0_i32_1 = arith.constant 0 : i32
    return %c0_i32, %c0_i32_0 : i32, i32
  }
}

</mosaic_0001>

<bundles_post_ra>
// kernel: tpu_custom_call.1
= control target key start
LH: loop header
LB: loop body
LE: loop exit
PB: predicated region body
PF: predicated region fallthrough
CT: control target
= control target key end

     0   :  { %13 = vsyncpa [#allocation6], 0  ;;  %s1691_s24 = smov 0   ;;  %s1949_s0 = inlined_call_operand.vmem [shape: bf16[64,16], index: 0, kind: input, shape index: {}]   ;;  %s1950_s1 = inlined_call_operand.vmem [shape: bf16[64,16], index: 1, kind: input, shape index: {}]   ;;  %s1951_s2 = inlined_call_operand.vmem [shape: bf16[16,256], index: 2, kind: input, shape index: {}]   ;;  %s1952_s3 = inlined_call_operand.vmem [shape: bf16[64,256], index: 3, kind: input, shape index: {}]   ;;  %s1953_s4 = inlined_call_operand.vmem [shape: f32[1,256], index: 4, kind: input, shape index: {}]   ;;  %s1954_s5 = inlined_call_operand.vmem [shape: bf16[64,32], index: 5, kind: output, shape index: {0}]   ;;  %s1955_s6 = inlined_call_operand.vmem [shape: bf16[64,32], index: 6, kind: output, shape index: {1}]   ;;  %s1956_s7 = inlined_call_operand.hbm [shape: f32[8,32], index: 7, kind: output, shape index: {2}]  }
   0x1 LB: > { %s1697_s25 = sadd.s32 4294967295, %s1642_s24   ;;  %p1392_p0 = scmp.ge.s32.totalorder %s1642_s24, 1  ;;  %s1642_s24 = sphi %s1691_s24, %s19_s24  }
   0x2   : > { %p256_p1 = scmp.lt.s32.totalorder %s1642_s24, 3 }
   0x4   : > { %p257_p2 = pnand %p1392_p0, %p256_p1 }
   0x5   : > { %s1393_s26 = sshll.u32 (!%p257_p2), %s1697_s25, 2  ;;  %s306_s27 = ssub.s32 (!%p257_p2), 1, %s1697_s25 }
   0x6   : > { %260 = sbr.rel (%p257_p2) target bundleno = 3000 (0xbb8), region = 40  ;;  %p301_p3 = scmp.lt.s32.totalorder (!%p257_p2), %s1393_s26, 7 }
   0x7   : > { %s1395_s28 = sshll.u32 (!%p257_p2), %s306_s27, 2  ;;  %p1401_p5 = scmp.ne.s32.totalorder (!%p257_p2), %s1697_s25, 0 }
   0x8   : > { %p308_p4 = scmp.lt.s32.totalorder (!%p257_p2), %s1395_s28, 7 }
   0xd   : > { %s1958_s26 = smov (!%p301_p3, %s1393_s26), 7  ;;  %s1960_s28 = smov (!%p308_p4, %s1395_s28), 7 }
   0xe   : > { %s1394_s29 = sshll.u32 %s1958_s26, 2  ;;  %s1396_s10 = sshll.u32 %s1960_s28, 2  ;;  %vm333_vm0 = vcmask (!%p1401_p5), 261120   ;;  %v1644_v0 = vmov (!%p1401_p5), 0.0  }
   0xf   : > { %s304_s9 = scalar_lea.vmem %s1949_s0, %s1394_s29  ;;  %s1709_s13 = scalar_lea.vmem %s1950_s1, %s1396_s10  ;;  %334 = vst.msk [vmem:[#allocation4] sm:$0xff] (!%p1401_p5), %vm333_vm0, %v1644_v0  ;;  %335 = vst.msk [vmem:[#allocation4 + $0x8] sm:$0xff] (!%p1401_p5), %vm333_vm0, %v1644_v0 }
  0x10   : > { %s1714_s16 = scalar_lea.vmem %s1954_s5, %s1394_s29  ;;  %s1719_s19 = scalar_lea.vmem %s1955_s6, %s1396_s10  ;;  %336 = vst.msk [vmem:[#allocation4 + $0x10] sm:$0xff] (!%p1401_p5), %vm333_vm0, %v1644_v0  ;;  %337 = vst.msk [vmem:[#allocation4 + $0x18] sm:$0xff] (!%p1401_p5), %vm333_vm0, %v1644_v0 }
  0x11   : > { %332 = sbr.rel (%p1401_p5) target bundleno = 24 (0x18), region = 44 }
  0x18 PF: > { %v527_v1 = vld [vmem:[#allocation4 + $0x10] sm:$0xff]  ;;  %s1645_s20 = smov 32   ;;  %v1524_v2 = vld [vmem:[%s1951_s2] ss:$8 sps:$4 sm:$0xff]   ;;  %vm364_vm1 = vcmask 130048   ;;  %v1646_v13 = vmov 0  }
  0x19   : > { %531 = vrot.lane.b32.xlu0 %v527_v1, %s1645_s20  ;;  %v1525_v3 = vld [vmem:[%s304_s9] sm:$0xff]   ;;  %1491 = vmatprep.subr.bf16.mxu0 %v1524_v2  ;;  %v1526_v4 = vld [vmem:[%s304_s9 + $0x8] sm:$0xff]   ;;  %v1738_v7 = vld [vmem:[%s1952_s3 + $0x14] ss:$8 sps:$4 sm:$0xff]   ;;  %vm534_vm2 = vcmask 261120   ;;  %vm585_vm3 = vcmask 523264  }
  0x1a   : > { %1492 = vmatpush3.bf16.msra.mxu0 %v1524_v2  ;;  %1493 = vmatprep.mubr.msk.bf16.mxu0 %vm364_vm1, %v1525_v3  ;;  %v1730_v5 = vld [vmem:[%s1952_s3] ss:$8 sps:$4 sm:$0xff]   ;;  %v1529_v6 = vld [vmem:[%s1952_s3 + $0x4] ss:$8 sps:$4 sm:$0xff]   ;;  %v1747_v9 = vld [vmem:[%s1952_s3 + $0x10] ss:$8 sps:$4 sm:$0xff]  }
  0x1b   : > { %589 = vmatprep.subr.bf16.mxu0 %v1529_v6  ;;  %v1533_v8 = vld [vmem:[%s1951_s2 + $0x4] ss:$8 sps:$4 sm:$0xff]   ;;  %v1764_v14 = vld [vmem:[%s1952_s3 + $0x20] ss:$8 sps:$4 sm:$0xff]   ;;  %v1771_v15 = vld [vmem:[%s1952_s3 + $0x34] ss:$8 sps:$4 sm:$0xff]  }
  0x1c   : > { %1497 = vmatprep.subr.bf16.mxu1 %v1533_v8  ;;  %v1753_v10 = vld [vmem:[%s1952_s3 + $0x24] ss:$8 sps:$4 sm:$0xff]   ;;  %v1780_v16 = vld [vmem:[%s1952_s3 + $0x30] ss:$8 sps:$4 sm:$0xff]   ;;  %v1407_v21 = vld [vmem:[%s1953_s4] ss:$0 sm:$0xff] }
  0x1d   : > { %1494 = vmatmul.mubr.msk.bf16.vlgmr.msra.gmra.mrb[0].mxu0 %vm364_vm1, %v1526_v4  ;;  %1498 = vmatpush3.bf16.msra.mxu1 %v1533_v8  ;;  %v1537_v11 = vld [vmem:[%s1709_s13] sm:$0xff]   ;;  %v1538_v12 = vld [vmem:[%s1709_s13 + $0x8] sm:$0xff]   ;;  %v529_v47 = vld [vmem:[#allocation4 + $0x18] sm:$0xff]  ;;  %s1647_s29 = smov 64   ;;  %s1648_s30 = smov 96   ;;  %vm698_vm4 = vcmask 257024  }
  0x1e   : > { %590 = vmatpush1.bf16.msra.mxu0 %v1730_v5  ;;  %621 = vmatprep.mubr.bf16.mxu0 %v1646_v13  ;;  %v523_v17 = vld [vmem:[#allocation4] sm:$0xff]  ;;  %v525_v48 = vld [vmem:[#allocation4 + $0x8] sm:$0xff]  ;;  %p1472_p6 = scmp.ne.s32.totalorder %s1697_s25, 1 }
  0x1f   : > { %591 = vmatprep.subr.bf16.mxu0 %v1738_v7  ;;  %770 = vmatprep.subr.bf16.mxu1 %v1529_v6  ;;  %v1413_v28 = vld [vmem:[%s1953_s4 + $0x1] ss:$0 sm:$0xff] }
  0x20   : > { %1499 = vmatprep.mubr.msk.bf16.mxu1 %vm364_vm1, %v1537_v11 }
  0x21   : > { %1500 = vmatmul.mubr.msk.bf16.vlgmr.msra.gmra.mrb[0].mxu1 %vm364_vm1, %v1538_v12 }
  0x22   : > { %592 = vmatpush1.bf16.msra.mxu0 %v1747_v9  ;;  %771 = vmatpush1.bf16.msra.mxu1 %v1730_v5 }
  0x23   : > { %593 = vmatprep.subr.bf16.mxu0 %v1753_v10  ;;  %772 = vmatprep.subr.bf16.mxu1 %v1738_v7 }
  0x24   : > { %802 = vmatprep.mubr.bf16.mxu1 %v1646_v13 }
  0x26   : > { %594 = vmatpush1.bf16.msra.mxu0 %v1764_v14  ;;  %773 = vmatpush1.bf16.msra.mxu1 %v1747_v9 }
  0x27   : > { %595 = vmatprep.subr.bf16.mxu0 %v1771_v15  ;;  %774 = vmatprep.subr.bf16.mxu1 %v1753_v10 }
  0x2a   : > { %596 = vmatpush1.bf16.msra.mxu0 %v1780_v16  ;;  %775 = vmatpush1.bf16.msra.mxu1 %v1764_v14 }
  0x2b   : > { %944 = vmatprep.subr.bf16.mxu0 %v1529_v6  ;;  %776 = vmatprep.subr.bf16.mxu1 %v1771_v15 }
  0x2e   : > { %777 = vmatpush1.bf16.msra.mxu1 %v1780_v16 }
  0x2f   : > { %1118 = vmatprep.subr.bf16.mxu1 %v1529_v6 }
  0x8b   : > { %v532_v18 = vpop.permute.xlu0 %531 }
  0x8c   : > { %v535_v19 = vsel %vm534_vm2, %v523_v17, %v532_v18 }
  0x8d   : > { %v536_v20 = vpack.c.bf16 %v535_v19, %v535_v19 }
  0x8f   : > { %1422 = vmatmul.mubr.msk.bf16.vlgmr.msra.gmra.mrb[4].mxu0 %vm585_vm3, %v536_v20 }
  0x90   : > { %945 = vmatpush1.bf16.msra.mxu0 %v1730_v5  ;;  %976 = vmatprep.mubr.bf16.mxu0 %v1646_v13 }
  0x91   : > { %946 = vmatprep.subr.bf16.mxu0 %v1738_v7 }
  0x94   : > { %947 = vmatpush1.bf16.msra.mxu0 %v1747_v9 }
  0x95   : > { %948 = vmatprep.subr.bf16.mxu0 %v1753_v10 }
  0x98   : > { %949 = vmatpush1.bf16.msra.mxu0 %v1764_v14 }
  0x99   : > { %950 = vmatprep.subr.bf16.mxu0 %v1771_v15 }
  0x9c   : > { %951 = vmatpush1.bf16.msra.mxu0 %v1780_v16 }
  0xf0   : > { %v1495_v22 = vpop.f32.mrb[0].mxu0 }
  0xf1   : > { %v1802_v23 = vadd.f32 %v1495_v22, %v1407_v21  ;;  %v405_v24 = vpop.f32.mrb[1].mxu0 }
  0xf2   : > { %v1496_v25 = vpop.f32.mrb[2].mxu0  ;;  %v426_v37 = vadd.f32 %v1407_v21, %v405_v24 }
  0xf3   : > { %v1804_v26 = vadd.f32 %v1496_v25, %v1407_v21  ;;  %v408_v27 = vpop.f32.mrb[3].mxu0 }
  0xf4   : > { %v1809_v29 = vadd.f32 %v1407_v21, %v408_v27  ;;  %v1501_v30 = vpop.f32.mrb[0].mxu1 }
  0xf5   : > { %v1811_v31 = vadd.f32 %v1501_v30, %v1413_v28  ;;  %v490_v32 = vpop.f32.mrb[1].mxu1 }
  0xf6   : > { %v1813_v33 = vadd.f32 %v1413_v28, %v490_v32  ;;  %v1502_v34 = vpop.f32.mrb[2].mxu1 }
  0xf7   : > { %v493_v35 = vpop.f32.mrb[3].mxu1  ;;  %v514_v38 = vadd.f32 %v1502_v34, %v1413_v28 }
  0xf8   : > { %v1815_v36 = vadd.f32 %v1413_v28, %v493_v35 }
 0x162   : > { %v623_v39 = vpop.f32.mrb[4].mxu0 }
 0x163   : > { %v631_v40 = vadd.f32 %v623_v39, %v426_v37  ;;  %v625_v41 = vpop.f32.mrb[5].mxu0 }
 0x164   : > { %v634_v42 = vadd.f32 %v625_v41, %v514_v38  ;;  %v627_v43 = vpop.f32.mrb[6].mxu0 }
 0x165   : > { %1542 = vtanh.f32 %v631_v40  ;;  %v628_v44 = vpop.f32.mrb[7].mxu0  ;;  %v1423_v49 = vmul.f32 -1.442695, %v631_v40 }
 0x166   : > { %1544 = vtanh.f32 %v634_v42  ;;  %v1424_v50 = vmul.f32 -1.442695, %v634_v42 }
 0x167   : > { %1546 = vpow2.f32 %v1423_v49 }
 0x168   : > { %1548 = vpow2.f32 %v1424_v50 }
 0x16f   : > { %v1543_v45 = vpop.eup %1542 }
 0x170   : > { %v1545_v46 = vpop.eup %1544  ;;  %648 = vrot.lane.b32.xlu0 %v1543_v45, %s1645_s20 }
 0x171   : > { %676 = vrot.lane.b32.xlu1 %v1545_v46, %s1645_s20  ;;  %v1547_v51 = vpop.eup %1546 }
 0x172   : > { %v1549_v52 = vpop.eup %1548  ;;  %v638_v53 = vadd.f32 1.0, %v1547_v51 }
 0x173   : > { %v666_v54 = vadd.f32 1.0, %v1549_v52 }
 0x174   : > { %671 = vrot.lane.b32.xlu0 %v529_v47, %s1645_s20  ;;  %1550 = vrcp.f32 %v638_v53 }
 0x175   : > { %643 = vrot.lane.b32.xlu1 %v525_v48, %s1645_s20  ;;  %1552 = vrcp.f32 %v666_v54 }
 0x17e   : > { %v1551_v55 = vpop.eup %1550 }
 0x17f   : > { %v1553_v57 = vpop.eup %1552 }
 0x1e2   : > { %v649_v56 = vpop.permute.xlu0 %648 }
 0x1e3   : > { %v651_v58 = vmul.f32 %v1551_v55, %v649_v56  ;;  %v677_v59 = vpop.permute.xlu1 %676 }
 0x1e4   : > { %v679_v60 = vmul.f32 %v1553_v57, %v677_v59 }
 0x1e5   : > { %653 = vrot.lane.b32.xlu1 %v651_v58, %s1645_s20 }
 0x1e6   : > { %681 = vrot.lane.b32.xlu0 %v679_v60, %s1645_s20  ;;  %v672_v62 = vpop.permute.xlu0 %671 }
 0x1e7   : > { %v644_v61 = vpop.permute.xlu1 %643  ;;  %v674_v0 = vmul.f32 %v1553_v57, %v672_v62 }
 0x1e8   : > { %v646_v63 = vmul.f32 %v1551_v55, %v644_v61 }
 0x257   : > { %v654_v1 = vpop.permute.xlu1 %653 }
 0x258   : > { %v656_v2 = vadd.f32 %v654_v1, %v646_v63  ;;  %v682_v3 = vpop.permute.xlu0 %681 }
 0x259   : > { %v684_v4 = vadd.f32 %v682_v3, %v674_v0 }
 0x25a   : > { %1554 = vtanh.f32 %v656_v2 }
 0x25b   : > { %1556 = vtanh.f32 %v684_v4 }
 0x264   : > { %v1555_v6 = vpop.eup %1554 }
 0x265   : > { %v1557_v8 = vpop.eup %1556  ;;  %659 = vrot.lane.b32.xlu1 %v1555_v6, %s1645_s20 }
 0x266   : > { %687 = vrot.lane.b32.xlu0 %v1557_v8, %s1645_s20 }
 0x2d7   : > { %v660_v11 = vpop.permute.xlu1 %659 }
 0x2d8   : > { %v1825_v12 = vmul.f32 %v1551_v55, %v660_v11  ;;  %v688_v17 = vpop.permute.xlu0 %687 }
 0x2d9   : > { %v1827_v18 = vmul.f32 %v1553_v57, %v688_v17 }
 0x2da   : > { %710 = vrot.lane.b32.xlu1 %v1825_v12, %s1647_s29 }
 0x2db   : > { %714 = vrot.lane.b32.xlu0 %v1827_v18, %s1648_s30 }
 0x34c   : > { %v711_v19 = vpop.permute.xlu1 %710 }
 0x34d   : > { %v715_v20 = vpop.permute.xlu0 %714 }
 0x34e   : > { %v717_v21 = vsel %vm534_vm2, %v711_v19, %v715_v20 }
 0x34f   : > { %v718_v22 = vpack.c.bf16 %v717_v21, %v717_v21 }
 0x351   : > { %1436 = vmatmul.mubr.msk.bf16.vlgmr.msra.gmra.mrb[4].mxu1 %vm585_vm3, %v718_v22 }
 0x352   : > { %1119 = vmatpush1.bf16.msra.mxu1 %v1730_v5  ;;  %1150 = vmatprep.mubr.bf16.mxu1 %v1646_v13 }
 0x353   : > { %1120 = vmatprep.subr.bf16.mxu1 %v1738_v7 }
 0x356   : > { %1121 = vmatpush1.bf16.msra.mxu1 %v1747_v9 }
 0x357   : > { %1122 = vmatprep.subr.bf16.mxu1 %v1753_v10 }
 0x35a   : > { %1123 = vmatpush1.bf16.msra.mxu1 %v1764_v14 }
 0x35b   : > { %1124 = vmatprep.subr.bf16.mxu1 %v1771_v15 }
 0x35e   : > { %1125 = vmatpush1.bf16.msra.mxu1 %v1780_v16 }
 0x424   : > { %v804_v24 = vpop.f32.mrb[4].mxu1 }
 0x425   : > { %v813_v25 = vadd.f32 %v804_v24, %v1809_v29  ;;  %v806_v27 = vpop.f32.mrb[5].mxu1 }
 0x426   : > { %v816_v5 = vadd.f32 %v806_v27, %v1811_v31  ;;  %v808_v28 = vpop.f32.mrb[6].mxu1 }
 0x427   : > { %1558 = vtanh.f32 %v813_v25  ;;  %v809_v13 = vpop.f32.mrb[7].mxu1  ;;  %v1437_v10 = vmul.f32 -1.442695, %v813_v25 }
 0x428   : > { %1560 = vtanh.f32 %v816_v5  ;;  %v1438_v14 = vmul.f32 -1.442695, %v816_v5 }
 0x429   : > { %1562 = vpow2.f32 %v1437_v10 }
 0x42a   : > { %1564 = vpow2.f32 %v1438_v14 }
 0x431   : > { %v1559_v7 = vpop.eup %1558 }
 0x432   : > { %v1561_v9 = vpop.eup %1560  ;;  %826 = vrot.lane.b32.xlu1 %v1559_v7, %s1645_s20 }
 0x433   : > { %850 = vrot.lane.b32.xlu0 %v1561_v9, %s1645_s20  ;;  %v1563_v15 = vpop.eup %1562 }
 0x434   : > { %v1565_v16 = vpop.eup %1564  ;;  %v820_v29 = vadd.f32 1.0, %v1563_v15 }
 0x435   : > { %v844_v30 = vadd.f32 1.0, %v1565_v16 }
 0x436   : > { %1566 = vrcp.f32 %v820_v29 }
 0x437   : > { %1568 = vrcp.f32 %v844_v30 }
 0x440   : > { %v1567_v31 = vpop.eup %1566 }
 0x441   : > { %v1569_v34 = vpop.eup %1568  ;;  %v824_v39 = vmul.f32 %v1567_v31, %v656_v2 }
 0x442   : > { %v848_v41 = vmul.f32 %v1569_v34, %v684_v4 }
 0x4a4   : > { %v827_v32 = vpop.permute.xlu1 %826 }
 0x4a5   : > { %v829_v35 = vmul.f32 %v1567_v31, %v827_v32  ;;  %v851_v37 = vpop.permute.xlu0 %850 }
 0x4a6   : > { %v853_v38 = vmul.f32 %v1569_v34, %v851_v37 }
 0x4a7   : > { %831 = vrot.lane.b32.xlu1 %v829_v35, %s1645_s20 }
 0x4a8   : > { %855 = vrot.lane.b32.xlu0 %v853_v38, %s1645_s20 }
 0x519   : > { %v832_v40 = vpop.permute.xlu1 %831 }
 0x51a   : > { %v834_v42 = vadd.f32 %v832_v40, %v824_v39  ;;  %v856_v43 = vpop.permute.xlu0 %855 }
 0x51b   : > { %v858_v44 = vadd.f32 %v856_v43, %v848_v41 }
 0x51c   : > { %1570 = vtanh.f32 %v834_v42 }
 0x51d   : > { %1572 = vtanh.f32 %v858_v44 }
 0x526   : > { %v1571_v45 = vpop.eup %1570 }
 0x527   : > { %v1573_v46 = vpop.eup %1572  ;;  %837 = vrot.lane.b32.xlu1 %v1571_v45, %s1645_s20 }
 0x528   : > { %861 = vrot.lane.b32.xlu0 %v1573_v46, %s1645_s20 }
 0x599   : > { %v838_v47 = vpop.permute.xlu1 %837 }
 0x59a   : > { %v1851_v48 = vmul.f32 %v1567_v31, %v838_v47  ;;  %v862_v49 = vpop.permute.xlu0 %861 }
 0x59b   : > { %v1853_v50 = vmul.f32 %v1569_v34, %v862_v49 }
 0x59c   : > { %884 = vrot.lane.b32.xlu1 %v1851_v48, %s1647_s29 }
 0x59d   : > { %888 = vrot.lane.b32.xlu0 %v1853_v50, %s1648_s30 }
 0x60e   : > { %v885_v51 = vpop.permute.xlu1 %884 }
 0x60f   : > { %v889_v52 = vpop.permute.xlu0 %888 }
 0x610   : > { %v891_v53 = vsel %vm534_vm2, %v885_v51, %v889_v52 }
 0x611   : > { %v892_v54 = vpack.c.bf16 %v891_v53, %v891_v53 }
 0x613   : > { %1451 = vmatmul.mubr.msk.bf16.vlgmr.msra.gmra.mrb[8].mxu0 %vm585_vm3, %v892_v54 }
 0x6e6   : > { %v978_v55 = vpop.f32.mrb[8].mxu0 }
 0x6e7   : > { %v987_v56 = vadd.f32 %v978_v55, %v1802_v23  ;;  %v980_v57 = vpop.f32.mrb[9].mxu0 }
 0x6e8   : > { %v990_v58 = vadd.f32 %v980_v57, %v1815_v36  ;;  %v982_v59 = vpop.f32.mrb[10].mxu0 }
 0x6e9   : > { %1574 = vtanh.f32 %v987_v56  ;;  %v983_v60 = vpop.f32.mrb[11].mxu0  ;;  %v1452_v63 = vmul.f32 -1.442695, %v987_v56  ;;  %v1477_v59 = vpack.c.bf16 %v1825_v12, %v1825_v12 }
 0x6ea   : > { %1576 = vtanh.f32 %v990_v58  ;;  %v1453_v0 = vmul.f32 -1.442695, %v990_v58  ;;  %v1478_v60 = vpack.c.bf16 %v1827_v18, %v1827_v18 }
 0x6eb   : > { %1578 = vpow2.f32 %v1452_v63 }
 0x6ec   : > { %1580 = vpow2.f32 %v1453_v0 }
 0x6f3   : > { %v1575_v61 = vpop.eup %1574 }
 0x6f4   : > { %v1577_v62 = vpop.eup %1576  ;;  %1000 = vrot.lane.b32.xlu1 %v1575_v61, %s1645_s20  ;;  %v1479_v61 = vpack.c.bf16 %v1851_v48, %v1851_v48 }
 0x6f5   : > { %1024 = vrot.lane.b32.xlu0 %v1577_v62, %s1645_s20  ;;  %v1579_v1 = vpop.eup %1578  ;;  %v1480_v62 = vpack.c.bf16 %v1853_v50, %v1853_v50 }
 0x6f6   : > { %v1581_v2 = vpop.eup %1580  ;;  %v994_v23 = vadd.f32 1.0, %v1579_v1 }
 0x6f7   : > { %v1018_v3 = vadd.f32 1.0, %v1581_v2 }
 0x6f8   : > { %1582 = vrcp.f32 %v994_v23 }
 0x6f9   : > { %1584 = vrcp.f32 %v1018_v3 }
 0x702   : > { %v1583_v36 = vpop.eup %1582 }
 0x703   : > { %v1585_v6 = vpop.eup %1584  ;;  %v998_v19 = vmul.f32 %v1583_v36, %v834_v42 }
 0x704   : > { %v1022_v21 = vmul.f32 %v1585_v6, %v858_v44 }
 0x766   : > { %v1001_v4 = vpop.permute.xlu1 %1000 }
 0x767   : > { %v1003_v8 = vmul.f32 %v1583_v36, %v1001_v4  ;;  %v1025_v11 = vpop.permute.xlu0 %1024 }
 0x768   : > { %v1027_v17 = vmul.f32 %v1585_v6, %v1025_v11 }
 0x769   : > { %1005 = vrot.lane.b32.xlu1 %v1003_v8, %s1645_s20 }
 0x76a   : > { %1029 = vrot.lane.b32.xlu0 %v1027_v17, %s1645_s20 }
 0x7db   : > { %v1006_v20 = vpop.permute.xlu1 %1005 }
 0x7dc   : > { %v1008_v22 = vadd.f32 %v1006_v20, %v998_v19  ;;  %v1030_v24 = vpop.permute.xlu0 %1029 }
 0x7dd   : > { %v1032_v25 = vadd.f32 %v1030_v24, %v1022_v21 }
 0x7de   : > { %1586 = vtanh.f32 %v1008_v22 }
 0x7df   : > { %1588 = vtanh.f32 %v1032_v25 }
 0x7e8   : > { %v1587_v27 = vpop.eup %1586 }
 0x7e9   : > { %v1589_v5 = vpop.eup %1588  ;;  %1011 = vrot.lane.b32.xlu1 %v1587_v27, %s1645_s20 }
 0x7ea   : > { %1035 = vrot.lane.b32.xlu0 %v1589_v5, %s1645_s20 }
 0x85b   : > { %v1012_v28 = vpop.permute.xlu1 %1011 }
 0x85c   : > { %v1014_v13 = vmul.f32 %v1583_v36, %v1012_v28  ;;  %v1036_v7 = vpop.permute.xlu0 %1035 }
 0x85d   : > { %v1038_v9 = vmul.f32 %v1585_v6, %v1036_v7 }
 0x85e   : > { %1058 = vrot.lane.b32.xlu1 %v1014_v13, %s1647_s29  ;;  %v1481_v63 = vpack.c.bf16 %v1014_v13, %v1014_v13 }
 0x85f   : > { %1062 = vrot.lane.b32.xlu0 %v1038_v9, %s1648_s30  ;;  %v1482_v12 = vpack.c.bf16 %v1038_v9, %v1038_v9 }
 0x8d0   : > { %v1059_v10 = vpop.permute.xlu1 %1058 }
 0x8d1   : > { %v1063_v14 = vpop.permute.xlu0 %1062 }
 0x8d2   : > { %v1065_v15 = vsel %vm534_vm2, %v1059_v10, %v1063_v14 }
 0x8d3   : > { %v1066_v16 = vpack.c.bf16 %v1065_v15, %v1065_v15 }
 0x8d5   : > { %1466 = vmatmul.mubr.msk.bf16.vlgmr.msra.gmra.mrb[8].mxu1 %vm585_vm3, %v1066_v16 }
 0x9a8   : > { %v1152_v29 = vpop.f32.mrb[8].mxu1 }
 0x9a9   : > { %v1161_v30 = vadd.f32 %v1152_v29, %v1804_v26  ;;  %v1154_v31 = vpop.f32.mrb[9].mxu1 }
 0x9aa   : > { %v1163_v32 = vadd.f32 %v1154_v31, %v1813_v33  ;;  %v1156_v34 = vpop.f32.mrb[10].mxu1 }
 0x9ab   : > { %1590 = vtanh.f32 %v1161_v30  ;;  %v1157_v35 = vpop.f32.mrb[11].mxu1  ;;  %v1467_v39 = vmul.f32 -1.442695, %v1161_v30 }
 0x9ac   : > { %1592 = vtanh.f32 %v1163_v32  ;;  %v1468_v40 = vmul.f32 -1.442695, %v1163_v32 }
 0x9ad   : > { %1594 = vpow2.f32 %v1467_v39 }
 0x9ae   : > { %1596 = vpow2.f32 %v1468_v40 }
 0x9b5   : > { %v1591_v37 = vpop.eup %1590 }
 0x9b6   : > { %v1593_v38 = vpop.eup %1592  ;;  %1173 = vrot.lane.b32.xlu1 %v1591_v37, %s1645_s20 }
 0x9b7   : > { %1197 = vrot.lane.b32.xlu0 %v1593_v38, %s1645_s20  ;;  %v1595_v41 = vpop.eup %1594 }
 0x9b8   : > { %v1597_v42 = vpop.eup %1596  ;;  %v1167_v26 = vadd.f32 1.0, %v1595_v41 }
 0x9b9   : > { %v1191_v43 = vadd.f32 1.0, %v1597_v42 }
 0x9ba   : > { %1598 = vrcp.f32 %v1167_v26 }
 0x9bb   : > { %1600 = vrcp.f32 %v1191_v43 }
 0x9c4   : > { %v1599_v33 = vpop.eup %1598 }
 0x9c5   : > { %v1601_v45 = vpop.eup %1600  ;;  %v1171_v51 = vmul.f32 %v1599_v33, %v1008_v22 }
 0x9c6   : > { %v1195_v53 = vmul.f32 %v1601_v45, %v1032_v25 }
 0xa28   : > { %v1174_v44 = vpop.permute.xlu1 %1173 }
 0xa29   : > { %v1176_v46 = vmul.f32 %v1599_v33, %v1174_v44  ;;  %v1198_v47 = vpop.permute.xlu0 %1197 }
 0xa2a   : > { %v1200_v49 = vmul.f32 %v1601_v45, %v1198_v47 }
 0xa2b   : > { %1178 = vrot.lane.b32.xlu1 %v1176_v46, %s1645_s20 }
 0xa2c   : > { %1202 = vrot.lane.b32.xlu0 %v1200_v49, %s1645_s20 }
 0xa9d   : > { %v1179_v52 = vpop.permute.xlu1 %1178 }
 0xa9e   : > { %v1181_v54 = vadd.f32 %v1179_v52, %v1171_v51  ;;  %v1203_v55 = vpop.permute.xlu0 %1202 }
 0xa9f   : > { %v1205_v56 = vadd.f32 %v1203_v55, %v1195_v53 }
 0xaa0   : > { %1602 = vtanh.f32 %v1181_v54 }
 0xaa1   : > { %1604 = vtanh.f32 %v1205_v56 }
 0xaaa   : > { %v1603_v57 = vpop.eup %1602 }
 0xaab   : > { %v1605_v58 = vpop.eup %1604  ;;  %1184 = vrot.lane.b32.xlu1 %v1603_v57, %s1645_s20 }
 0xaac   : > { %1208 = vrot.lane.b32.xlu0 %v1605_v58, %s1645_s20  ;;  %s1649_s20 = smov (!%p1472_p6), 64  }
 0xaaf   : > { %695 = vrot.lane.b32.xlu1 %v1477_v59, %s1647_s29 }
 0xab0   : > { %704 = vrot.lane.b32.xlu0 %v1478_v60, %s1647_s29 }
 0xab3   : > { %869 = vrot.lane.b32.xlu1 %v1479_v61, %s1647_s29 }
 0xab4   : > { %878 = vrot.lane.b32.xlu0 %v1480_v62, %s1647_s29 }
 0xab7   : > { %1043 = vrot.lane.b32.xlu1 %v1481_v63, %s1647_s29 }
 0xab8   : > { %1052 = vrot.lane.b32.xlu0 %v1482_v12, %s1647_s29 }
 0xabc   : > { %1235 = vrot.lane.b32.xlu0 %v1181_v54, %s1648_s30 }
 0xb1d   : > { %v1185_v18 = vpop.permute.xlu1 %1184 }
 0xb1e   : > { %v1187_v48 = vmul.f32 %v1599_v33, %v1185_v18  ;;  %v1209_v0 = vpop.permute.xlu0 %1208 }
 0xb1f   : > { %v1211_v50 = vmul.f32 %v1601_v45, %v1209_v0 }
 0xb20   : > { %1230 = vrot.lane.b32.xlu1 %v1187_v48, %s1647_s29  ;;  %v1483_v23 = vpack.c.bf16 %v1187_v48, %v1187_v48 }
 0xb21   : > { %v1484_v1 = vpack.c.bf16 %v1211_v50, %v1211_v50  ;;  %v696_v2 = vpop.permute.xlu1 %695  ;;  %v1253_v24 = vadd.f32 (!%p1472_p6), %v1211_v50, %v1187_v48 }
 0xb22   : > { %699 = vst.msk [vmem:[%s1714_s16] sm:$0xf] %vm698_vm4, %v696_v2  ;;  %v705_v3 = vpop.permute.xlu0 %704 }
 0xb23   : > { %1427 = vst.msk [vmem:[%s1719_s19 + $0xc] sm:$0xf] %vm698_vm4, %v705_v3  ;;  %1225 = vrot.lane.b32.xlu0 %v1484_v1, %s1647_s29 }
 0xb24   : > { %1216 = vrot.lane.b32.xlu1 %v1483_v23, %s1647_s29 }
 0xb25   : > { %v870_v36 = vpop.permute.xlu1 %869 }
 0xb26   : > { %1440 = vst.msk [vmem:[%s1714_s16 + $0x4] sm:$0xf] %vm698_vm4, %v870_v36  ;;  %v879_v4 = vpop.permute.xlu0 %878 }
 0xb27   : > { %1442 = vst.msk [vmem:[%s1719_s19 + $0x8] sm:$0xf] %vm698_vm4, %v879_v4  ;;  %1245 = vrot.lane.b32.xlu0 %v1205_v56, %s1648_s30 }
 0xb28   : > { %1240 = vrot.lane.b32.xlu1 %v1211_v50, %s1647_s29 }
 0xb29   : > { %v1044_v6 = vpop.permute.xlu1 %1043 }
 0xb2a   : > { %1455 = vst.msk [vmem:[%s1714_s16 + $0x8] sm:$0xf] %vm698_vm4, %v1044_v6  ;;  %v1053_v8 = vpop.permute.xlu0 %1052 }
 0xb2b   : > { %1457 = vst.msk [vmem:[%s1719_s19 + $0x4] sm:$0xf] %vm698_vm4, %v1053_v8  ;;  %1255 = vrot.lane.b32.xlu0 (!%p1472_p6), %v1253_v24, %s1649_s20 }
 0xb2e   : > { %v1236_v11 = vpop.permute.xlu0 %1235 }
 0xb2f   : > { %1238 = vst.msk [vmem:[#allocation4 + $0x8] sm:$0xff] %vm534_vm2, %v1236_v11 }
 0xb92   : > { %v1231_v17 = vpop.permute.xlu1 %1230 }
 0xb93   : > { %1233 = vst.msk [vmem:[#allocation4] sm:$0xff] %vm534_vm2, %v1231_v17 }
 0xb95   : > { %v1226_v19 = vpop.permute.xlu0 %1225  ;;  %1252 = sbr.rel (%p1472_p6) target bundleno = 2975 (0xb9f), region = 48 }
 0xb96   : > { %1228 = vst.msk [vmem:[%s1719_s19] sm:$0xf] %vm698_vm4, %v1226_v19  ;;  %v1217_v20 = vpop.permute.xlu1 %1216 }
 0xb97   : > { %1470 = vst.msk [vmem:[%s1714_s16 + $0xc] sm:$0xf] %vm698_vm4, %v1217_v20 }
 0xb99   : > { %v1246_v21 = vpop.permute.xlu0 %1245 }
 0xb9a   : > { %1248 = vst.msk [vmem:[#allocation4 + $0x18] sm:$0xff] %vm534_vm2, %v1246_v21  ;;  %v1241_v22 = vpop.permute.xlu1 %1240 }
 0xb9b   : > { %1243 = vst.msk [vmem:[#allocation4 + $0x10] sm:$0xff] %vm534_vm2, %v1241_v22 }
 0xb9d   : > { %v1256_v25 = vpop.permute.xlu0 %1255 }
 0xb9e   : > { %1258 = vst.msk [vmem:[#allocation5] sm:$0xff] %vm534_vm2, %v1256_v25 }
 0xb9f PF: > { %p1507_p7 = scmp.eq.s32.totalorder %s1697_s25, 1  ;;  %s1650_s16 = smov [#allocation5]  }
 0xba0   : > { %s1286_s19 = sshll.u32 %s1650_s16, 4  ;;  %s1287_s19 = int_to_ptr.vmem [resolvable:$true] %s1286_s19 }
 0xba1   : > { %s1606_s8 = scalar_lea.vmem %s1287_s19, 128  ;;  %p1613_p11 = scmp.lt.s32.totalorder %s1287_s19, %s1287_s19 }
 0xba2   : > { %p1607_p8 = scmp.ne.s32.totalorder %s1287_s19, %s1606_s8  ;;  %p1614_p12 = scmp.lt.s32.totalorder %s1606_s8, %s1606_s8 }
 0xba4   : > { %p1608_p9 = pnand %p1607_p8, %p1507_p7  ;;  %p1615_p13 = por %p1614_p12, %p1613_p11 }
 0xba6   : > { %p1609_p10 = pneg %p1608_p9 }
 0xba8   : > { %p1616_p0 = pnand %p1615_p13, %p1609_p10 }
 0xbaa   : > { %1619 = shalt.err (!%p1616_p0)
}
 0xbab   : > { %s1620_s11 = scalar_lea.hbm %s1956_s7, 128 }
 0xbac   : > { %p1621_p1 = scmp.ne.s32.totalorder %s1956_s7, %s1620_s11  ;;  %p1626_p4 = scmp.lt.u32.totalorder %s1620_s11, %s1956_s7 }
 0xbae   : > { %p1622_p2 = pnand %p1621_p1, %p1507_p7 }
 0xbb0   : > { %p1623_p3 = pneg %p1622_p2 }
 0xbb2   : > { %p1628_p5 = pnand %p1626_p4, %p1623_p3 }
 0xbb4   : > { %1631 = shalt.err (!%p1628_p5)
}
 0xbb5   : > { %1504 = dma.vmem_to_hbm [thread:$0]  (%p1507_p7), %s1287_s19, 128, %s1956_s7, [#allocation6]  }
 0xbb6   : > { %1637 = dma.done.wait (%p1507_p7), [#allocation6], 128  }
 0xbb7   : > { %1639 = vsyncadd (%p1507_p7), [#allocation6], 4294967168 }
 0xbb8 PF: > { %s19_s24 = sadd.s32 1, %s1642_s24  }
 0xbb9   : > { %p16_p6 = scmp.ge.s32.totalorder %s19_s24, 4  }
 0xbbb   :  { %18 = sbr.rel (!%p16_p6) target bundleno = 1 (0x1), region = 117 }
 0xbc2   :  { %1316 = vsyncpa [#allocation6], 1 }
 0xbc3   :  { %1318 = vsyncpa [#allocation6 + $0x1], 1 }

</bundles_post_ra>
